<compile_context>
chip_gen: v7x
topology: tpu7x:2x2x1
jax: 0.10.0
libtpu: 0.0.40
codegen_flags: <defaults>
</compile_context>

<pallas_src>
import math
import functools

import numpy as np
import jax
import jax.numpy as jnp
from jax.experimental import pallas as pl
from jax.experimental.pallas import tpu as pltpu


def _residual_block_kernel(LC, mxu_dtype,
                           x_ref, cond_ref, dproj_ref,
                           wx_ref, wcd_ref, wd_ref, bgf_ref,
                           wo_ref, bo_ref,
                           res_ref, skip_ref):
    x = x_ref[...].astype(jnp.float32)                  # (TB, LC) lane-dense

    def mm(a, w):
        if mxu_dtype is not None:
            a = a.astype(mxu_dtype)
            w = w.astype(mxu_dtype)
        return jnp.dot(a, w, preferred_element_type=jnp.float32)

    # [gate | filter] pre-activation: circular conv + conditioner + diffusion.
    gf = (mm(x, wx_ref[...])
          + mm(cond_ref[...], wcd_ref[...])
          + mm(dproj_ref[...], wd_ref[...])
          + bgf_ref[...])                               # (TB, 2*LC)

    gate = gf[:, :LC]                                   # 128-lane aligned slices
    filt = gf[:, LC:]
    g = jax.nn.sigmoid(gate) * jnp.tanh(filt)           # (TB, LC) float32

    # [residual | skip] output projection + leaky_relu(0.4).
    y = mm(g, wo_ref[...]) + bo_ref[...]                # (TB, 2*LC)
    y = jnp.where(y > 0, y, np.float32(0.4) * y)

    inv_sqrt2 = np.float32(1.0 / math.sqrt(2.0))
    res_ref[...] = ((x + y[:, :LC]) * inv_sqrt2).astype(res_ref.dtype)
    skip_ref[...] = y[:, LC:].astype(skip_ref.dtype)


def _round_up(a, m):
    return -(-a // m) * m


def _pick_block_n(N, target=1024):
    """Block size along the flattened batch axis: multiple of 8, <= target,
    and small enough that the grid has >= 2 steps when N allows (megacore)."""
    tb = min(target, _round_up(N, 8))
    if N >= 16:
        tb = min(tb, _round_up(-(-N // 2), 8))
    return max(8, _round_up(tb, 8))


def residual_block_forward(x, conditioner, diffusion_step, params, dilation,
                           *, block_n=1024, mxu_dtype=None):
    B, T, L, C = x.shape
    H = conditioner.shape[-1]
    if not (1 <= int(dilation) < L):
        raise ValueError(
            f"circular dilated conv requires 1 <= dilation < L (got {dilation}, L={L})")

    N = B * T
    LC = L * C
    f32 = jnp.float32

    wc = params['w_conv'].astype(f32)          # (2C, C, 3) = (out, in, tap)
    w_cond = params['w_cond'].astype(f32)      # (2C, H)
    w_out = params['w_out'].astype(f32)        # (2C, C)
    w_diff = params['w_diff'].astype(f32)      # (C, H)

    eye_L = jnp.eye(L, dtype=f32)

    def shift_perm(sh):
        # S[l', l] = 1 iff l' == (l + sh) % L   (circular tap selection)
        return jnp.roll(eye_L, sh, axis=0)

    tap_shift = (-int(dilation), 0, int(dilation))      # (k-1)*dilation, k = 0,1,2

    # Block-diagonal circular-conv matrix, columns ordered [gate block | filter block],
    # both blocks laid out as (l, c_out) flattened -> matches the x lane layout.
    wx_gate = sum(jnp.kron(shift_perm(s), wc[:C, :, k].T) for k, s in enumerate(tap_shift))
    wx_filt = sum(jnp.kron(shift_perm(s), wc[C:, :, k].T) for k, s in enumerate(tap_shift))
    wx = jnp.concatenate([wx_gate, wx_filt], axis=1)                     # (LC, 2*LC)

    wcd = jnp.concatenate([jnp.kron(eye_L, w_cond[:C].T),
                           jnp.kron(eye_L, w_cond[C:].T)], axis=1)       # (L*H, 2*LC)

    # Diffusion projection contributes sum_k w_conv[:, :, k] @ dproj, identical for
    # every l: bake the broadcast over L into the weight columns (tiled), so the
    # kernel applies it with one tiny (TB, C) @ (C, 2*LC) matmul.
    w_dsum = jnp.sum(wc, axis=2).T                                       # (C, 2C) in x out
    wd = jnp.concatenate([jnp.tile(w_dsum[:, :C], (1, L)),
                          jnp.tile(w_dsum[:, C:], (1, L))], axis=1)      # (C, 2*LC)

    bgf = jnp.concatenate(
        [jnp.tile(params['b_conv'][:C] + params['b_cond'][:C], L),
         jnp.tile(params['b_conv'][C:] + params['b_cond'][C:], L)]
    ).astype(f32).reshape(1, 2 * LC)

    wo = jnp.concatenate([jnp.kron(eye_L, w_out[:C].T),
                          jnp.kron(eye_L, w_out[C:].T)], axis=1)         # (LC, 2*LC)
    bo = jnp.concatenate([jnp.tile(params['b_out'][:C], L),
                          jnp.tile(params['b_out'][C:], L)]).astype(f32).reshape(1, 2 * LC)

    # Hoisted diffusion projection: one small XLA matmul, streamed as (N, C).
    dproj = (diffusion_step.reshape(N, H).astype(f32) @ w_diff.T
             + params['b_diff'].astype(f32))                             # (N, C)

    xf = x.reshape(N, LC)                   # lane-dense: last dim L*C (=128 here)
    condf = conditioner.reshape(N, L * H)   # lane-dense: last dim L*H (=512 here)

    TB = _pick_block_n(N, block_n)
    Npad = _round_up(N, TB)
    if Npad != N:                            # cdiv grid via cheap wrapper-side padding
        pad = ((0, Npad - N), (0, 0))
        xf = jnp.pad(xf, pad)
        condf = jnp.pad(condf, pad)
        dproj = jnp.pad(dproj, pad)
    grid = (Npad // TB,)

    kernel = functools.partial(_residual_block_kernel, LC, mxu_dtype)

    def full(shape):
        nd = len(shape)
        return pl.BlockSpec(shape, lambda n, _nd=nd: (0,) * _nd)

    in_specs = [
        pl.BlockSpec((TB, LC), lambda n: (n, 0)),       # x  (lane-dense)
        pl.BlockSpec((TB, L * H), lambda n: (n, 0)),    # conditioner (lane-dense)
        pl.BlockSpec((TB, C), lambda n: (n, 0)),        # hoisted diffusion projection
        full((LC, 2 * LC)),                             # block-diag circular conv [gate|filter]
        full((L * H, 2 * LC)),                          # block-diag conditioner projection
        full((C, 2 * LC)),                              # diffusion -> gate/filter (tiled over L)
        full((1, 2 * LC)),                              # fused conv+cond biases
        full((LC, 2 * LC)),                             # block-diag output projection [res|skip]
        full((1, 2 * LC)),                              # output bias
    ]
    out_specs = [
        pl.BlockSpec((TB, LC), lambda n: (n, 0)),
        pl.BlockSpec((TB, LC), lambda n: (n, 0)),
    ]
    out_shape = [
        jax.ShapeDtypeStruct((Npad, LC), x.dtype),
        jax.ShapeDtypeStruct((Npad, LC), x.dtype),
    ]

    # VMEM footprint at TB=1024: ~3.7 MB/step of streamed blocks, double-buffered,
    # + ~0.8 MB of weights -> well under the 32 MiB limit on every generation
    # (v7x scoped default included). Raise block_n + this limit together on v5e.
    res, skip = pl.pallas_call(
        kernel,
        grid_spec=pltpu.PrefetchScalarGridSpec(
            num_scalar_prefetch=0,
            grid=grid,
            in_specs=in_specs,
            out_specs=out_specs,
        ),
        out_shape=out_shape,
        compiler_params=pltpu.CompilerParams(
            dimension_semantics=("parallel",),
            vmem_limit_bytes=32 * 1024 * 1024,
        ),
    )(xf, condf, dproj, wx, wcd, wd, bgf, wo, bo)

    res = res[:N].reshape(B, T, L, C)
    skip = skip[:N].reshape(B, T, L, C)
    return res, skip


def init_params(key, hidden_size, residual_channels):
    C, H = residual_channels, hidden_size
    ks = jax.random.split(key, 8)

    def kaiming(k, shape, fan_in):
        return jax.random.normal(k, shape, jnp.float32) * np.float32(math.sqrt(2.0 / fan_in))

    return dict(
        w_conv=kaiming(ks[0], (2 * C, C, 3), C * 3),   # Conv1d weight (out, in, k)
        b_conv=jax.random.normal(ks[1], (2 * C,), jnp.float32) * 0.05,
        w_diff=kaiming(ks[2], (C, H), H),              # Linear (out, in)
        b_diff=jax.random.normal(ks[3], (C,), jnp.float32) * 0.05,
        w_cond=kaiming(ks[4], (2 * C, H), H),
        b_cond=jax.random.normal(ks[5], (2 * C,), jnp.float32) * 0.05,
        w_out=kaiming(ks[6], (2 * C, C), C),
        b_out=jax.random.normal(ks[7], (2 * C,), jnp.float32) * 0.05,
    )


def ref_forward(x, conditioner, diffusion_step, params, dil):
    """Pure-JAX reference mirroring the PyTorch forward exactly."""
    B, T, L, C = x.shape
    dproj = diffusion_step @ params['w_diff'].T + params['b_diff']   # (B, T, C)
    dproj = dproj[:, :, None, :]
    cond = conditioner @ params['w_cond'].T + params['b_cond']       # (B, T, L, 2C)

    y = x + dproj
    y = jnp.transpose(y, (0, 1, 3, 2)).reshape(B * T, C, L)          # NCL
    ypad = jnp.concatenate([y[:, :, L - dil:], y, y[:, :, :dil]], axis=-1)  # circular pad
    conv = jax.lax.conv_general_dilated(
        ypad, params['w_conv'], window_strides=(1,), padding='VALID',
        rhs_dilation=(dil,), dimension_numbers=('NCH', 'OIH', 'NCH'))
    conv = conv + params['b_conv'][None, :, None]
    y = jnp.transpose(conv, (0, 2, 1)).reshape(B, T, L, 2 * C) + cond

    gate, filt = y[..., :C], y[..., C:]
    y = jax.nn.sigmoid(gate) * jnp.tanh(filt)
    y = y @ params['w_out'].T + params['b_out']
    y = jnp.where(y > 0, y, 0.4 * y)
    residual, skip = y[..., :C], y[..., C:]
    return (x + residual) / math.sqrt(2.0), skip


if __name__ == "__main__":
    key = jax.random.PRNGKey(0)
    B, T, L, C, H, dil = 2, 4, 16, 8, 32, 2

    k1, k2, k3, kp = jax.random.split(key, 4)
    x = jax.random.normal(k1, (B, T, L, C), jnp.float32)
    conditioner = jax.random.normal(k2, (B, T, L, H), jnp.float32)
    diffusion_step = jax.random.normal(k3, (B, T, H), jnp.float32)
    params = init_params(kp, H, C)

    res, skip = residual_block_forward(x, conditioner, diffusion_step, params, dil)
    jax.block_until_ready((res, skip))

    res_ref, skip_ref = ref_forward(x, conditioner, diffusion_step, params, dil)
    assert np.allclose(np.asarray(res), np.asarray(res_ref), atol=1e-4, rtol=1e-4)
    assert np.allclose(np.asarray(skip), np.asarray(skip_ref), atol=1e-4, rtol=1e-4)

    print("KERNEL_OK")
</pallas_src>

<mosaic_0001>
module attributes {stable_mosaic.version = 11 : i64} {
  func.func @_residual_block_kernel(%arg0: i32, %arg1: memref<8x128xf32, #tpu.memory_space<vmem>>, %arg2: memref<8x512xf32, #tpu.memory_space<vmem>>, %arg3: memref<8x8xf32, #tpu.memory_space<vmem>>, %arg4: memref<128x256xf32, #tpu.memory_space<vmem>>, %arg5: memref<512x256xf32, #tpu.memory_space<vmem>>, %arg6: memref<8x256xf32, #tpu.memory_space<vmem>>, %arg7: memref<1x256xf32, #tpu.memory_space<vmem>>, %arg8: memref<128x256xf32, #tpu.memory_space<vmem>>, %arg9: memref<1x256xf32, #tpu.memory_space<vmem>>, %arg10: memref<8x128xf32, #tpu.memory_space<vmem>>, %arg11: memref<8x128xf32, #tpu.memory_space<vmem>>) attributes {dimension_semantics = [#tpu.dimension_semantics<parallel>], iteration_bounds = array<i64: 1>, scalar_prefetch = 0 : i64, scratch_operands = 0 : i64, tpu.core_type = #tpu.core_type<tc>, window_params = [{transform_indices = @transform_0, window_bounds = array<i64: 8, 128>}, {transform_indices = @transform_1, window_bounds = array<i64: 8, 512>}, {transform_indices = @transform_2, window_bounds = array<i64: 8, 8>}, {pipeline_mode = #tpu.pipeline_mode<synchronous>, transform_indices = @transform_3, window_bounds = array<i64: 128, 256>}, {pipeline_mode = #tpu.pipeline_mode<synchronous>, transform_indices = @transform_4, window_bounds = array<i64: 512, 256>}, {pipeline_mode = #tpu.pipeline_mode<synchronous>, transform_indices = @transform_5, window_bounds = array<i64: 8, 256>}, {pipeline_mode = #tpu.pipeline_mode<synchronous>, transform_indices = @transform_6, window_bounds = array<i64: 1, 256>}, {pipeline_mode = #tpu.pipeline_mode<synchronous>, transform_indices = @transform_7, window_bounds = array<i64: 128, 256>}, {pipeline_mode = #tpu.pipeline_mode<synchronous>, transform_indices = @transform_8, window_bounds = array<i64: 1, 256>}, {transform_indices = @transform_9, window_bounds = array<i64: 8, 128>}, {transform_indices = @transform_10, window_bounds = array<i64: 8, 128>}]} {
    %c0 = arith.constant 0 : index
    %c0_0 = arith.constant 0 : index
    %0 = vector.load %arg1[%c0, %c0_0] : memref<8x128xf32, #tpu.memory_space<vmem>>, vector<8x128xf32>
    %c0_1 = arith.constant 0 : index
    %c0_2 = arith.constant 0 : index
    %1 = vector.load %arg4[%c0_1, %c0_2] : memref<128x256xf32, #tpu.memory_space<vmem>>, vector<128x256xf32>
    %cst = arith.constant dense<0.000000e+00> : vector<8x256xf32>
    %2 = tpu.matmul %0, %1, %cst {dimension_numbers = #tpu.dot_dimension_numbers<[1], [0], [0], [1], [0, 0, 1, 1], [], []>} : vector<8x128xf32>, vector<128x256xf32>, vector<8x256xf32> -> vector<8x256xf32>
    %c0_3 = arith.constant 0 : index
    %c0_4 = arith.constant 0 : index
    %3 = vector.load %arg2[%c0_3, %c0_4] : memref<8x512xf32, #tpu.memory_space<vmem>>, vector<8x512xf32>
    %c0_5 = arith.constant 0 : index
    %c0_6 = arith.constant 0 : index
    %4 = vector.load %arg5[%c0_5, %c0_6] : memref<512x256xf32, #tpu.memory_space<vmem>>, vector<512x256xf32>
    %cst_7 = arith.constant dense<0.000000e+00> : vector<8x256xf32>
    %5 = tpu.matmul %3, %4, %cst_7 {dimension_numbers = #tpu.dot_dimension_numbers<[1], [0], [0], [1], [0, 0, 1, 1], [], []>} : vector<8x512xf32>, vector<512x256xf32>, vector<8x256xf32> -> vector<8x256xf32>
    %6 = arith.addf %2, %5 : vector<8x256xf32>
    %c0_8 = arith.constant 0 : index
    %c0_9 = arith.constant 0 : index
    %7 = vector.load %arg3[%c0_8, %c0_9] : memref<8x8xf32, #tpu.memory_space<vmem>>, vector<8x8xf32>
    %c0_10 = arith.constant 0 : index
    %c0_11 = arith.constant 0 : index
    %8 = vector.load %arg6[%c0_10, %c0_11] : memref<8x256xf32, #tpu.memory_space<vmem>>, vector<8x256xf32>
    %cst_12 = arith.constant dense<0.000000e+00> : vector<8x256xf32>
    %9 = tpu.matmul %7, %8, %cst_12 {dimension_numbers = #tpu.dot_dimension_numbers<[1], [0], [0], [1], [0, 0, 1, 1], [], []>} : vector<8x8xf32>, vector<8x256xf32>, vector<8x256xf32> -> vector<8x256xf32>
    %10 = arith.addf %6, %9 : vector<8x256xf32>
    %c0_13 = arith.constant 0 : index
    %c0_14 = arith.constant 0 : index
    %11 = vector.load %arg7[%c0_13, %c0_14] : memref<1x256xf32, #tpu.memory_space<vmem>>, vector<1x256xf32>
    %12 = vector.broadcast %11 : vector<1x256xf32> to vector<8x256xf32>
    %13 = arith.addf %10, %12 : vector<8x256xf32>
    %14 = vector.extract_strided_slice %13 {offsets = [0, 0], sizes = [8, 128], strides = [1, 1]} : vector<8x256xf32> to vector<8x128xf32>
    %15 = vector.extract_strided_slice %13 {offsets = [0, 128], sizes = [8, 128], strides = [1, 1]} : vector<8x256xf32> to vector<8x128xf32>
    %16 = arith.negf %14 : vector<8x128xf32>
    %17 = math.exp %16 : vector<8x128xf32>
    %cst_15 = arith.constant 1.000000e+00 : f32
    %18 = vector.broadcast %cst_15 : f32 to vector<8x128xf32>
    %19 = arith.addf %18, %17 : vector<8x128xf32>
    %20 = arith.divf %18, %19 : vector<8x128xf32>
    %21 = math.tanh %15 : vector<8x128xf32>
    %22 = arith.mulf %20, %21 : vector<8x128xf32>
    %c0_16 = arith.constant 0 : index
    %c0_17 = arith.constant 0 : index
    %23 = vector.load %arg8[%c0_16, %c0_17] : memref<128x256xf32, #tpu.memory_space<vmem>>, vector<128x256xf32>
    %cst_18 = arith.constant dense<0.000000e+00> : vector<8x256xf32>
    %24 = tpu.matmul %22, %23, %cst_18 {dimension_numbers = #tpu.dot_dimension_numbers<[1], [0], [0], [1], [0, 0, 1, 1], [], []>} : vector<8x128xf32>, vector<128x256xf32>, vector<8x256xf32> -> vector<8x256xf32>
    %c0_19 = arith.constant 0 : index
    %c0_20 = arith.constant 0 : index
    %25 = vector.load %arg9[%c0_19, %c0_20] : memref<1x256xf32, #tpu.memory_space<vmem>>, vector<1x256xf32>
    %26 = vector.broadcast %25 : vector<1x256xf32> to vector<8x256xf32>
    %27 = arith.addf %24, %26 : vector<8x256xf32>
    %cst_21 = arith.constant 0.000000e+00 : f32
    %28 = vector.broadcast %cst_21 : f32 to vector<8x256xf32>
    %29 = arith.cmpf ogt, %27, %28 : vector<8x256xf32>
    %cst_22 = arith.constant 4.000000e-01 : f32
    %30 = vector.broadcast %cst_22 : f32 to vector<8x256xf32>
    %31 = arith.mulf %30, %27 : vector<8x256xf32>
    %32 = arith.select %29, %27, %31 : vector<8x256xi1>, vector<8x256xf32>
    %33 = vector.extract_strided_slice %32 {offsets = [0, 0], sizes = [8, 128], strides = [1, 1]} : vector<8x256xf32> to vector<8x128xf32>
    %34 = arith.addf %0, %33 : vector<8x128xf32>
    %cst_23 = arith.constant 0.707106769 : f32
    %35 = vector.broadcast %cst_23 : f32 to vector<8x128xf32>
    %36 = arith.mulf %34, %35 : vector<8x128xf32>
    %c0_24 = arith.constant 0 : index
    %c0_25 = arith.constant 0 : index
    %37 = vector.load %arg10[%c0_24, %c0_25] : memref<8x128xf32, #tpu.memory_space<vmem>>, vector<8x128xf32>
    tpu.vector_store %arg10[%c0_24, %c0_25], %36 {strides = array<i32>} : memref<8x128xf32, #tpu.memory_space<vmem>>, vector<8x128xf32>,
    %38 = vector.extract_strided_slice %32 {offsets = [0, 128], sizes = [8, 128], strides = [1, 1]} : vector<8x256xf32> to vector<8x128xf32>
    %c0_26 = arith.constant 0 : index
    %c0_27 = arith.constant 0 : index
    %39 = vector.load %arg11[%c0_26, %c0_27] : memref<8x128xf32, #tpu.memory_space<vmem>>, vector<8x128xf32>
    tpu.vector_store %arg11[%c0_26, %c0_27], %38 {strides = array<i32>} : memref<8x128xf32, #tpu.memory_space<vmem>>, vector<8x128xf32>,
    return
  }
  func.func @transform_0(%arg0: i32) -> (i32, i32) {
    %c0_i32 = arith.constant 0 : i32
    %c0_i32_0 = arith.constant 0 : i32
    return %arg0, %c0_i32 : i32, i32
  }
  func.func @transform_1(%arg0: i32) -> (i32, i32) {
    %c0_i32 = arith.constant 0 : i32
    %c0_i32_0 = arith.constant 0 : i32
    return %arg0, %c0_i32 : i32, i32
  }
  func.func @transform_2(%arg0: i32) -> (i32, i32) {
    %c0_i32 = arith.constant 0 : i32
    %c0_i32_0 = arith.constant 0 : i32
    return %arg0, %c0_i32 : i32, i32
  }
  func.func @transform_3(%arg0: i32) -> (i32, i32) {
    %c0_i32 = arith.constant 0 : i32
    %c0_i32_0 = arith.constant 0 : i32
    %c0_i32_1 = arith.constant 0 : i32
    return %c0_i32, %c0_i32_0 : i32, i32
  }
  func.func @transform_4(%arg0: i32) -> (i32, i32) {
    %c0_i32 = arith.constant 0 : i32
    %c0_i32_0 = arith.constant 0 : i32
    %c0_i32_1 = arith.constant 0 : i32
    return %c0_i32, %c0_i32_0 : i32, i32
  }
  func.func @transform_5(%arg0: i32) -> (i32, i32) {
    %c0_i32 = arith.constant 0 : i32
    %c0_i32_0 = arith.constant 0 : i32
    %c0_i32_1 = arith.constant 0 : i32
    return %c0_i32, %c0_i32_0 : i32, i32
  }
  func.func @transform_6(%arg0: i32) -> (i32, i32) {
    %c0_i32 = arith.constant 0 : i32
    %c0_i32_0 = arith.constant 0 : i32
    %c0_i32_1 = arith.constant 0 : i32
    return %c0_i32, %c0_i32_0 : i32, i32
  }
  func.func @transform_7(%arg0: i32) -> (i32, i32) {
    %c0_i32 = arith.constant 0 : i32
    %c0_i32_0 = arith.constant 0 : i32
    %c0_i32_1 = arith.constant 0 : i32
    return %c0_i32, %c0_i32_0 : i32, i32
  }
  func.func @transform_8(%arg0: i32) -> (i32, i32) {
    %c0_i32 = arith.constant 0 : i32
    %c0_i32_0 = arith.constant 0 : i32
    %c0_i32_1 = arith.constant 0 : i32
    return %c0_i32, %c0_i32_0 : i32, i32
  }
  func.func @transform_9(%arg0: i32) -> (i32, i32) {
    %c0_i32 = arith.constant 0 : i32
    %c0_i32_0 = arith.constant 0 : i32
    return %arg0, %c0_i32 : i32, i32
  }
  func.func @transform_10(%arg0: i32) -> (i32, i32) {
    %c0_i32 = arith.constant 0 : i32
    %c0_i32_0 = arith.constant 0 : i32
    return %arg0, %c0_i32 : i32, i32
  }
}

</mosaic_0001>

<bundles_post_ra>
// kernel: tpu_custom_call.1
= control target key start
LH: loop header
LB: loop body
LE: loop exit
PB: predicated region body
PF: predicated region fallthrough
CT: control target
= control target key end

     0   :  { %16 = vsyncpa [#allocation3], 0  ;;  %s1365_s0 = inlined_call_operand.hbm [shape: f32[8,128], index: 0, kind: input, shape index: {}]   ;;  %s1366_s1 = inlined_call_operand.hbm [shape: f32[8,512], index: 1, kind: input, shape index: {}]   ;;  %s1367_s2 = inlined_call_operand.hbm [shape: f32[8,8], index: 2, kind: input, shape index: {}]   ;;  %s1368_s3 = inlined_call_operand.hbm [shape: f32[128,256], index: 3, kind: input, shape index: {}]   ;;  %s1369_s4 = inlined_call_operand.hbm [shape: f32[512,256], index: 4, kind: input, shape index: {}]   ;;  %s1370_s5 = inlined_call_operand.vmem [shape: f32[8,256], index: 5, kind: input, shape index: {}]   ;;  %s1371_s6 = inlined_call_operand.vmem [shape: f32[1,256], index: 6, kind: input, shape index: {}]   ;;  %s1372_s7 = inlined_call_operand.hbm [shape: f32[128,256], index: 7, kind: input, shape index: {}]   ;;  %s1373_s8 = inlined_call_operand.vmem [shape: f32[1,256], index: 8, kind: input, shape index: {}]   ;;  %s1374_s9 = inlined_call_operand.hbm [shape: f32[8,128], index: 9, kind: output, shape index: {0}]   ;;  %s1375_s10 = inlined_call_operand.hbm [shape: f32[8,128], index: 10, kind: output, shape index: {1}]  }
   0x1   :  { %17 = vsyncpa [#allocation6], 0 }
   0x2   :  { %18 = vsyncpa [#allocation9], 0 }
   0x3   :  { %19 = vsyncpa [#allocation12], 0 }
   0x4   :  { %20 = vsyncpa [#allocation4], 0 }
   0x5   :  { %21 = vsyncpa [#allocation15], 0  ;;  %s1154_s13 = smov [#allocation5]   ;;  %s1155_s15 = smov [#allocation8]  }
   0x6   :  { %s38_s14 = sshll.u32 %s1154_s13, 4  ;;  %s57_s16 = sshll.u32 %s1155_s15, 4  ;;  %s39_s14 = int_to_ptr.vmem [resolvable:$true] %s38_s14  ;;  %s1220_s16 = int_to_ptr.vmem [resolvable:$true] %s57_s16 }
   0x7   :  { %s966_s19 = scalar_lea.hbm %s1366_s1, 512 }
   0x8   :  { %p967_p0 = scmp.ne.s32.totalorder %s1366_s1, %s966_s19  ;;  %p970_p1 = scmp.lt.u32.totalorder %s966_s19, %s1366_s1 }
   0xa   :  { %p972_p2 = pnand %p970_p1, %p967_p0 }
   0xc   :  { %975 = shalt.err (!%p972_p2)
}
   0xd   :  { %s976_s24 = scalar_lea.vmem %s39_s14, 512  ;;  %p981_p4 = scmp.lt.s32.totalorder %s39_s14, %s39_s14 }
   0xe   :  { %p977_p3 = scmp.ne.s32.totalorder %s39_s14, %s976_s24  ;;  %p982_p5 = scmp.lt.s32.totalorder %s976_s24, %s976_s24 }
  0x10   :  { %p983_p6 = por %p982_p5, %p981_p4 }
  0x12   :  { %p984_p7 = pnand %p983_p6, %p977_p3 }
  0x14   :  { %987 = shalt.err (!%p984_p7)
}
  0x15   :  { %41 = dma.hbm_to_vmem [thread:$0]  %s1366_s1, 512, %s39_s14, [#allocation6]  }
  0x16   :  { %s988_s29 = scalar_lea.hbm %s1368_s3, 4096 }
  0x17   :  { %p989_p8 = scmp.ne.s32.totalorder %s1368_s3, %s988_s29  ;;  %p992_p9 = scmp.lt.u32.totalorder %s988_s29, %s1368_s3 }
  0x19   :  { %p994_p10 = pnand %p992_p9, %p989_p8 }
  0x1b   :  { %997 = shalt.err (!%p994_p10)
}
  0x1c   :  { %s998_s15 = scalar_lea.vmem %s1220_s16, 4096  ;;  %p1003_p12 = scmp.lt.s32.totalorder %s1220_s16, %s1220_s16 }
  0x1d   :  { %p999_p11 = scmp.ne.s32.totalorder %s1220_s16, %s998_s15  ;;  %p1004_p13 = scmp.lt.s32.totalorder %s998_s15, %s998_s15 }
  0x1f   :  { %p1005_p0 = por %p1004_p13, %p1003_p12 }
  0x21   :  { %p1006_p1 = pnand %p1005_p0, %p999_p11 }
  0x23   :  { %1009 = shalt.err (!%p1006_p1)
}
  0x24   :  { %s1156_s1 = smov 256   ;;  %s1157_s14 = smov 16  }
  0x25   :  { %63 = dma.hbm_to_vmem [thread:$0]  %s1368_s3, 4096, %s1220_s16, [#allocation9], %s1156_s1, %s1156_s1, %s1157_s14  }
  0x26   :  { %s1158_s19 = smov [#allocation2]   ;;  %s1159_s21 = smov [#allocation7]  }
  0x27   :  { %s28_s20 = sshll.u32 %s1158_s19, 4  ;;  %s48_s22 = sshll.u32 %s1159_s21, 4  ;;  %s29_s20 = int_to_ptr.vmem [resolvable:$true] %s28_s20  ;;  %s49_s22 = int_to_ptr.vmem [resolvable:$true] %s48_s22 }
  0x28   :  { %s1010_s25 = scalar_lea.hbm %s1365_s0, 128 }
  0x29   :  { %p1011_p2 = scmp.ne.s32.totalorder %s1365_s0, %s1010_s25  ;;  %p1014_p3 = scmp.lt.u32.totalorder %s1010_s25, %s1365_s0 }
  0x2b   :  { %p1016_p4 = pnand %p1014_p3, %p1011_p2 }
  0x2d   :  { %1019 = shalt.err (!%p1016_p4)
}
  0x2e   :  { %s1020_s3 = scalar_lea.vmem %s29_s20, 128  ;;  %p1025_p6 = scmp.lt.s32.totalorder %s29_s20, %s29_s20 }
  0x2f   :  { %p1021_p5 = scmp.ne.s32.totalorder %s29_s20, %s1020_s3  ;;  %p1026_p7 = scmp.lt.s32.totalorder %s1020_s3, %s1020_s3 }
  0x31   :  { %p1027_p8 = por %p1026_p7, %p1025_p6 }
  0x33   :  { %p1028_p9 = pnand %p1027_p8, %p1021_p5 }
  0x35   :  { %1031 = shalt.err (!%p1028_p9)
}
  0x36   :  { %31 = dma.hbm_to_vmem [thread:$0]  %s1365_s0, 128, %s29_s20, [#allocation3]  }
  0x37   :  { %s1032_s13 = scalar_lea.hbm %s1367_s2, 128 }
  0x38   :  { %p1033_p10 = scmp.ne.s32.totalorder %s1367_s2, %s1032_s13  ;;  %p1036_p11 = scmp.lt.u32.totalorder %s1032_s13, %s1367_s2 }
  0x3a   :  { %p1038_p12 = pnand %p1036_p11, %p1033_p10 }
  0x3c   :  { %1041 = shalt.err (!%p1038_p12)
}
  0x3d   :  { %s1042_s21 = scalar_lea.vmem %s49_s22, 128  ;;  %p1047_p0 = scmp.lt.s32.totalorder %s49_s22, %s49_s22 }
  0x3e   :  { %p1043_p13 = scmp.ne.s32.totalorder %s49_s22, %s1042_s21  ;;  %p1048_p1 = scmp.lt.s32.totalorder %s1042_s21, %s1042_s21 }
  0x40   :  { %p1049_p2 = por %p1048_p1, %p1047_p0 }
  0x42   :  { %p1050_p3 = pnand %p1049_p2, %p1043_p13 }
  0x44   :  { %1053 = shalt.err (!%p1050_p3)
}
  0x45   :  { %51 = dma.hbm_to_vmem [thread:$0]  %s1367_s2, 128, %s49_s22, [#allocation6]  }
  0x46   :  { %s1160_s23 = smov [#allocation10]   ;;  %s1161_s25 = smov [#allocation11]  }
  0x47   :  { %s69_s24 = sshll.u32 %s1160_s23, 4  ;;  %s85_s26 = sshll.u32 %s1161_s25, 4  ;;  %s70_s24 = int_to_ptr.vmem [resolvable:$true] %s69_s24  ;;  %s1278_s26 = int_to_ptr.vmem [resolvable:$true] %s85_s26 }
  0x48   :  { %s1054_s29 = scalar_lea.hbm %s1369_s4, 16384 }
  0x49   :  { %p1055_p4 = scmp.ne.s32.totalorder %s1369_s4, %s1054_s29  ;;  %p1058_p5 = scmp.lt.u32.totalorder %s1054_s29, %s1369_s4 }
  0x4b   :  { %p1060_p6 = pnand %p1058_p5, %p1055_p4 }
  0x4d   :  { %1063 = shalt.err (!%p1060_p6)
}
  0x4e   :  { %s1064_s2 = scalar_lea.vmem %s70_s24, 16384  ;;  %p1069_p8 = scmp.lt.s32.totalorder %s70_s24, %s70_s24 }
  0x4f   :  { %p1065_p7 = scmp.ne.s32.totalorder %s70_s24, %s1064_s2  ;;  %p1070_p9 = scmp.lt.s32.totalorder %s1064_s2, %s1064_s2 }
  0x51   :  { %p1071_p10 = por %p1070_p9, %p1069_p8 }
  0x53   :  { %p1072_p11 = pnand %p1071_p10, %p1065_p7 }
  0x55   :  { %1075 = shalt.err (!%p1072_p11)
}
  0x56   :  { %75 = dma.hbm_to_vmem [thread:$0]  %s1369_s4, 16384, %s70_s24, [#allocation9], %s1156_s1, %s1156_s1, %s1157_s14  }
  0x57   :  { %s1076_s17 = scalar_lea.hbm %s1372_s7, 4096 }
  0x58   :  { %p1077_p12 = scmp.ne.s32.totalorder %s1372_s7, %s1076_s17  ;;  %p1080_p13 = scmp.lt.u32.totalorder %s1076_s17, %s1372_s7 }
  0x5a   :  { %p1082_p0 = pnand %p1080_p13, %p1077_p12 }
  0x5c   :  { %1085 = shalt.err (!%p1082_p0)
}
  0x5d   :  { %s1086_s20 = scalar_lea.vmem %s1278_s26, 4096  ;;  %p1091_p2 = scmp.lt.s32.totalorder %s1278_s26, %s1278_s26 }
  0x5e   :  { %p1087_p1 = scmp.ne.s32.totalorder %s1278_s26, %s1086_s20  ;;  %p1092_p3 = scmp.lt.s32.totalorder %s1086_s20, %s1086_s20 }
  0x60   :  { %p1093_p4 = por %p1092_p3, %p1091_p2 }
  0x62   :  { %p1094_p5 = pnand %p1093_p4, %p1087_p1 }
  0x64   :  { %1097 = shalt.err (!%p1094_p5)
}
  0x65   :  { %91 = dma.hbm_to_vmem [thread:$0]  %s1372_s7, 4096, %s1278_s26, [#allocation12], %s1156_s1, %s1156_s1, %s1157_s14  }
  0x66   :  { %1142 = dma.done.wait [#allocation3], 128  }
  0x67   :  { %1143 = vsyncadd [#allocation3], 4294967168 }
  0x68   :  { %1144 = dma.done.wait [#allocation6], 640  }
  0x69   :  { %1145 = vsyncadd [#allocation6], 4294966656 }
  0x6a   :  { %1146 = dma.done.wait [#allocation9], 20480  }
  0x6b   :  { %1147 = vsyncadd [#allocation9], 4294946816 }
  0x6c   :  { %1148 = dma.done.wait [#allocation12], 4096  }
  0x6d   :  { %1149 = vsyncadd [#allocation12], 4294963200  ;;  %v214_v0 = vld [vmem:[#allocation10 + $0x208] sm:$0xff]  ;;  %v216_v1 = vld [vmem:[#allocation10 + $0x218] sm:$0xff]  ;;  %vm493_vm0 = vcmask 64512   ;;  %s1163_s27 = smov [#allocation14]  }
  0x6e   :  { %v213_v2 = vld [vmem:[#allocation10 + $0x200] sm:$0xff]  ;;  %v815_v3 = vpack.c.bf16 %v216_v1, %v214_v0  ;;  %v215_v4 = vld [vmem:[#allocation10 + $0x210] sm:$0xff]  ;;  %v218_v5 = vld [vmem:[#allocation10 + $0x228] sm:$0xff]  ;;  %s733_s28 = sshll.u32 %s1163_s27, 4  ;;  %s1164_s29 = smov [#allocation13]   ;;  %s734_s28 = int_to_ptr.vmem [resolvable:$true] %s733_s28 }
  0x6f   :  { %v220_v6 = vld [vmem:[#allocation10 + $0x238] sm:$0xff]  ;;  %v817_v7 = vpack.c.bf16 %v215_v4, %v213_v2  ;;  %v217_v9 = vld [vmem:[#allocation10 + $0x220] sm:$0xff]  ;;  %v219_v10 = vld [vmem:[#allocation10 + $0x230] sm:$0xff]  ;;  %s723_s3 = sshll.u32 %s1164_s29, 4  ;;  %p1103_p7 = scmp.lt.s32.totalorder %s734_s28, %s734_s28  ;;  %s1334_s3 = int_to_ptr.vmem [resolvable:$true] %s723_s3 }
  0x70   :  { %v819_v8 = vpack.c.bf16 %v220_v6, %v218_v5  ;;  %v222_v11 = vld [vmem:[#allocation10 + $0x248] sm:$0xff]  ;;  %816 = vmatprep.subr.bf16.mxu0 %v815_v3  ;;  %v224_v12 = vld [vmem:[#allocation10 + $0x258] sm:$0xff]  ;;  %v821_v13 = vpack.c.bf16 %v219_v10, %v217_v9  ;;  %v221_v15 = vld [vmem:[#allocation10 + $0x240] sm:$0xff] }
  0x71   :  { %818 = vmatpush1.bf16.msra.mxu0 %v817_v7  ;;  %v823_v14 = vpack.c.bf16 %v224_v12, %v222_v11  ;;  %v223_v16 = vld [vmem:[#allocation10 + $0x250] sm:$0xff]  ;;  %v226_v17 = vld [vmem:[#allocation10 + $0x268] sm:$0xff]  ;;  %v228_v18 = vld [vmem:[#allocation10 + $0x278] sm:$0xff] }
  0x72   :  { %820 = vmatprep.subr.bf16.mxu0 %v819_v8  ;;  %v825_v19 = vpack.c.bf16 %v223_v16, %v221_v15  ;;  %v827_v20 = vpack.c.bf16 %v228_v18, %v226_v17  ;;  %v225_v21 = vld [vmem:[#allocation10 + $0x260] sm:$0xff]  ;;  %v227_v22 = vld [vmem:[#allocation10 + $0x270] sm:$0xff]  ;;  %v230_v23 = vld [vmem:[#allocation10 + $0x288] sm:$0xff] }
  0x73   :  { %v232_v24 = vld [vmem:[#allocation10 + $0x298] sm:$0xff]  ;;  %v829_v25 = vpack.c.bf16 %v227_v22, %v225_v21  ;;  %v229_v26 = vld [vmem:[#allocation10 + $0x280] sm:$0xff]  ;;  %v231_v28 = vld [vmem:[#allocation10 + $0x290] sm:$0xff] }
  0x74   :  { %v831_v27 = vpack.c.bf16 %v232_v24, %v230_v23  ;;  %v150_v29 = vld [vmem:[#allocation10 + $0x8] sm:$0xff]  ;;  %v152_v30 = vld [vmem:[#allocation10 + $0x18] sm:$0xff]  ;;  %v149_v34 = vld [vmem:[#allocation10] sm:$0xff]  ;;  %v833_v36 = vpack.c.bf16 %v231_v28, %v229_v26 }
  0x75   :  { %822 = vmatpush1.bf16.msra.mxu0 %v821_v13  ;;  %v234_v31 = vld [vmem:[#allocation10 + $0x2a8] sm:$0xff]  ;;  %v236_v32 = vld [vmem:[#allocation10 + $0x2b8] sm:$0xff]  ;;  %v751_v33 = vpack.c.bf16 %v152_v30, %v150_v29  ;;  %v151_v35 = vld [vmem:[#allocation10 + $0x10] sm:$0xff] }
  0x76   :  { %824 = vmatprep.subr.bf16.mxu0 %v823_v14  ;;  %v233_v37 = vld [vmem:[#allocation10 + $0x2a0] sm:$0xff]  ;;  %v753_v38 = vpack.c.bf16 %v151_v35, %v149_v34  ;;  %v154_v39 = vld [vmem:[#allocation10 + $0x28] sm:$0xff]  ;;  %v156_v40 = vld [vmem:[#allocation10 + $0x38] sm:$0xff]  ;;  %v835_v41 = vpack.c.bf16 %v236_v32, %v234_v31 }
  0x77   :  { %752 = vmatprep.subr.bf16.mxu1 %v751_v33  ;;  %v235_v42 = vld [vmem:[#allocation10 + $0x2b0] sm:$0xff]  ;;  %v755_v43 = vpack.c.bf16 %v156_v40, %v154_v39  ;;  %v153_v44 = vld [vmem:[#allocation10 + $0x20] sm:$0xff]  ;;  %v238_v46 = vld [vmem:[#allocation10 + $0x2c8] sm:$0xff] }
  0x78   :  { %v155_v45 = vld [vmem:[#allocation10 + $0x30] sm:$0xff]  ;;  %v240_v47 = vld [vmem:[#allocation10 + $0x2d8] sm:$0xff]  ;;  %754 = vmatpush1.bf16.msra.mxu1 %v753_v38  ;;  %v158_v49 = vld [vmem:[#allocation10 + $0x48] sm:$0xff]  ;;  %v837_v51 = vpack.c.bf16 %v235_v42, %v233_v37 }
  0x79   :  { %826 = vmatpush1.bf16.msra.mxu0 %v825_v19  ;;  %v757_v48 = vpack.c.bf16 %v155_v45, %v153_v44  ;;  %756 = vmatprep.subr.bf16.mxu1 %v755_v43  ;;  %v160_v50 = vld [vmem:[#allocation10 + $0x58] sm:$0xff]  ;;  %v237_v52 = vld [vmem:[#allocation10 + $0x2c0] sm:$0xff]  ;;  %v159_v55 = vld [vmem:[#allocation10 + $0x50] sm:$0xff]  ;;  %v839_v56 = vpack.c.bf16 %v240_v47, %v238_v46 }
  0x7a   :  { %828 = vmatprep.subr.bf16.mxu0 %v827_v20  ;;  %v759_v53 = vpack.c.bf16 %v160_v50, %v158_v49  ;;  %v157_v54 = vld [vmem:[#allocation10 + $0x40] sm:$0xff]  ;;  %v239_v57 = vld [vmem:[#allocation10 + $0x2d0] sm:$0xff]  ;;  %v162_v58 = vld [vmem:[#allocation10 + $0x68] sm:$0xff] }
  0x7b   :  { %v164_v59 = vld [vmem:[#allocation10 + $0x78] sm:$0xff]  ;;  %v242_v60 = vld [vmem:[#allocation10 + $0x2e8] sm:$0xff]  ;;  %v761_v62 = vpack.c.bf16 %v159_v55, %v157_v54  ;;  %v161_v0 = vld [vmem:[#allocation10 + $0x60] sm:$0xff]  ;;  %v841_v2 = vpack.c.bf16 %v239_v57, %v237_v52 }
  0x7c   :  { %v244_v61 = vld [vmem:[#allocation10 + $0x2f8] sm:$0xff]  ;;  %758 = vmatpush1.bf16.msra.mxu1 %v757_v48  ;;  %v763_v63 = vpack.c.bf16 %v164_v59, %v162_v58  ;;  %v163_v1 = vld [vmem:[#allocation10 + $0x70] sm:$0xff]  ;;  %v166_v3 = vld [vmem:[#allocation10 + $0x88] sm:$0xff] }
  0x7d   :  { %830 = vmatpush1.bf16.msra.mxu0 %v829_v25  ;;  %760 = vmatprep.subr.bf16.mxu1 %v759_v53  ;;  %v168_v4 = vld [vmem:[#allocation10 + $0x98] sm:$0xff]  ;;  %v843_v5 = vpack.c.bf16 %v244_v61, %v242_v60  ;;  %v241_v6 = vld [vmem:[#allocation10 + $0x2e0] sm:$0xff]  ;;  %v243_v7 = vld [vmem:[#allocation10 + $0x2f0] sm:$0xff]  ;;  %v765_v10 = vpack.c.bf16 %v163_v1, %v161_v0 }
  0x7e   :  { %832 = vmatprep.subr.bf16.mxu0 %v831_v27  ;;  %v246_v8 = vld [vmem:[#allocation10 + $0x308] sm:$0xff]  ;;  %v248_v9 = vld [vmem:[#allocation10 + $0x318] sm:$0xff]  ;;  %v767_v11 = vpack.c.bf16 %v168_v4, %v166_v3  ;;  %v165_v12 = vld [vmem:[#allocation10 + $0x80] sm:$0xff]  ;;  %v845_v14 = vpack.c.bf16 %v243_v7, %v241_v6 }
  0x7f   :  { %v167_v13 = vld [vmem:[#allocation10 + $0x90] sm:$0xff]  ;;  %v170_v15 = vld [vmem:[#allocation10 + $0xa8] sm:$0xff]  ;;  %v172_v16 = vld [vmem:[#allocation10 + $0xb8] sm:$0xff]  ;;  %v847_v17 = vpack.c.bf16 %v248_v9, %v246_v8 }
  0x80   :  { %762 = vmatpush1.bf16.msra.mxu1 %v761_v62  ;;  %v245_v18 = vld [vmem:[#allocation10 + $0x300] sm:$0xff]  ;;  %v247_v19 = vld [vmem:[#allocation10 + $0x310] sm:$0xff]  ;;  %v250_v20 = vld [vmem:[#allocation10 + $0x328] sm:$0xff]  ;;  %v769_v22 = vpack.c.bf16 %v167_v13, %v165_v12  ;;  %v771_v24 = vpack.c.bf16 %v172_v16, %v170_v15 }
  0x81   :  { %834 = vmatpush1.bf16.msra.mxu0 %v833_v36  ;;  %764 = vmatprep.subr.bf16.mxu1 %v763_v63  ;;  %v252_v21 = vld [vmem:[#allocation10 + $0x338] sm:$0xff]  ;;  %v148_v23 = vld [vmem:[#allocation5 + $0x18] sm:$0xff]  ;;  %v169_v25 = vld [vmem:[#allocation10 + $0xa0] sm:$0xff]  ;;  %v849_v27 = vpack.c.bf16 %v247_v19, %v245_v18 }
  0x82   :  { %836 = vmatprep.subr.bf16.mxu0 %v835_v41  ;;  %v171_v26 = vld [vmem:[#allocation10 + $0xb0] sm:$0xff]  ;;  %412 = vmatprep.mubr.f32.mxu0 %v148_v23  ;;  %v174_v28 = vld [vmem:[#allocation10 + $0xc8] sm:$0xff]  ;;  %v176_v29 = vld [vmem:[#allocation10 + $0xd8] sm:$0xff]  ;;  %v851_v30 = vpack.c.bf16 %v252_v21, %v250_v20 }
  0x83   :  { %v249_v31 = vld [vmem:[#allocation10 + $0x320] sm:$0xff]  ;;  %v251_v32 = vld [vmem:[#allocation10 + $0x330] sm:$0xff]  ;;  %v254_v33 = vld [vmem:[#allocation10 + $0x348] sm:$0xff]  ;;  %v773_v35 = vpack.c.bf16 %v171_v26, %v169_v25  ;;  %v775_v36 = vpack.c.bf16 %v176_v29, %v174_v28 }
  0x84   :  { %766 = vmatpush1.bf16.msra.mxu1 %v765_v10  ;;  %v256_v34 = vld [vmem:[#allocation10 + $0x358] sm:$0xff]  ;;  %v173_v37 = vld [vmem:[#allocation10 + $0xc0] sm:$0xff]  ;;  %v175_v38 = vld [vmem:[#allocation10 + $0xd0] sm:$0xff]  ;;  %v853_v39 = vpack.c.bf16 %v251_v32, %v249_v31 }
  0x85   :  { %838 = vmatpush1.bf16.msra.mxu0 %v837_v51  ;;  %768 = vmatprep.subr.bf16.mxu1 %v767_v11  ;;  %v178_v40 = vld [vmem:[#allocation10 + $0xe8] sm:$0xff]  ;;  %v180_v41 = vld [vmem:[#allocation10 + $0xf8] sm:$0xff]  ;;  %v855_v42 = vpack.c.bf16 %v256_v34, %v254_v33  ;;  %v253_v43 = vld [vmem:[#allocation10 + $0x340] sm:$0xff]  ;;  %v777_v47 = vpack.c.bf16 %v175_v38, %v173_v37 }
  0x86   :  { %840 = vmatprep.subr.bf16.mxu0 %v839_v56  ;;  %v255_v44 = vld [vmem:[#allocation10 + $0x350] sm:$0xff]  ;;  %v258_v45 = vld [vmem:[#allocation10 + $0x368] sm:$0xff]  ;;  %v260_v46 = vld [vmem:[#allocation10 + $0x378] sm:$0xff]  ;;  %v779_v48 = vpack.c.bf16 %v180_v41, %v178_v40 }
  0x87   :  { %v177_v49 = vld [vmem:[#allocation10 + $0xe0] sm:$0xff]  ;;  %v179_v50 = vld [vmem:[#allocation10 + $0xf0] sm:$0xff]  ;;  %v857_v51 = vpack.c.bf16 %v255_v44, %v253_v43  ;;  %v182_v52 = vld [vmem:[#allocation10 + $0x108] sm:$0xff]  ;;  %v859_v54 = vpack.c.bf16 %v260_v46, %v258_v45 }
  0x88   :  { %770 = vmatpush1.bf16.msra.mxu1 %v769_v22  ;;  %v184_v53 = vld [vmem:[#allocation10 + $0x118] sm:$0xff]  ;;  %v257_v55 = vld [vmem:[#allocation10 + $0x360] sm:$0xff]  ;;  %v259_v56 = vld [vmem:[#allocation10 + $0x370] sm:$0xff]  ;;  %v781_v59 = vpack.c.bf16 %v179_v50, %v177_v49 }
  0x89   :  { %842 = vmatpush1.bf16.msra.mxu0 %v841_v2  ;;  %772 = vmatprep.subr.bf16.mxu1 %v771_v24  ;;  %v262_v57 = vld [vmem:[#allocation10 + $0x388] sm:$0xff]  ;;  %v264_v58 = vld [vmem:[#allocation10 + $0x398] sm:$0xff]  ;;  %v783_v60 = vpack.c.bf16 %v184_v53, %v182_v52  ;;  %v181_v61 = vld [vmem:[#allocation10 + $0x100] sm:$0xff]  ;;  %v861_v63 = vpack.c.bf16 %v259_v56, %v257_v55 }
  0x8a   :  { %844 = vmatprep.subr.bf16.mxu0 %v843_v5  ;;  %v183_v62 = vld [vmem:[#allocation10 + $0x110] sm:$0xff]  ;;  %v186_v0 = vld [vmem:[#allocation10 + $0x128] sm:$0xff]  ;;  %v188_v1 = vld [vmem:[#allocation10 + $0x138] sm:$0xff]  ;;  %v863_v2 = vpack.c.bf16 %v264_v58, %v262_v57 }
  0x8b   :  { %v261_v3 = vld [vmem:[#allocation10 + $0x380] sm:$0xff]  ;;  %v263_v4 = vld [vmem:[#allocation10 + $0x390] sm:$0xff]  ;;  %v266_v5 = vld [vmem:[#allocation10 + $0x3a8] sm:$0xff]  ;;  %v785_v7 = vpack.c.bf16 %v183_v62, %v181_v61  ;;  %v787_v8 = vpack.c.bf16 %v188_v1, %v186_v0 }
  0x8c   :  { %774 = vmatpush1.bf16.msra.mxu1 %v773_v35  ;;  %v268_v6 = vld [vmem:[#allocation10 + $0x3b8] sm:$0xff]  ;;  %v185_v9 = vld [vmem:[#allocation10 + $0x120] sm:$0xff]  ;;  %v187_v10 = vld [vmem:[#allocation10 + $0x130] sm:$0xff]  ;;  %v865_v11 = vpack.c.bf16 %v263_v4, %v261_v3 }
  0x8d   :  { %846 = vmatpush1.bf16.msra.mxu0 %v845_v14  ;;  %776 = vmatprep.subr.bf16.mxu1 %v775_v36  ;;  %v190_v12 = vld [vmem:[#allocation10 + $0x148] sm:$0xff]  ;;  %v192_v13 = vld [vmem:[#allocation10 + $0x158] sm:$0xff]  ;;  %v867_v14 = vpack.c.bf16 %v268_v6, %v266_v5  ;;  %v265_v15 = vld [vmem:[#allocation10 + $0x3a0] sm:$0xff]  ;;  %v789_v19 = vpack.c.bf16 %v187_v10, %v185_v9  ;;  %v1162_v10 = vmov 0.0  }
  0x8e   :  { %848 = vmatprep.subr.bf16.mxu0 %v847_v17  ;;  %v267_v16 = vld [vmem:[#allocation10 + $0x3b0] sm:$0xff]  ;;  %v270_v17 = vld [vmem:[#allocation10 + $0x3c8] sm:$0xff]  ;;  %v272_v18 = vld [vmem:[#allocation10 + $0x3d8] sm:$0xff]  ;;  %v791_v20 = vpack.c.bf16 %v192_v13, %v190_v12 }
  0x8f   :  { %v189_v21 = vld [vmem:[#allocation10 + $0x140] sm:$0xff]  ;;  %v191_v22 = vld [vmem:[#allocation10 + $0x150] sm:$0xff]  ;;  %v869_v23 = vpack.c.bf16 %v267_v16, %v265_v15  ;;  %v194_v24 = vld [vmem:[#allocation10 + $0x168] sm:$0xff]  ;;  %v871_v26 = vpack.c.bf16 %v272_v18, %v270_v17 }
  0x90   :  { %778 = vmatpush1.bf16.msra.mxu1 %v777_v47  ;;  %v196_v25 = vld [vmem:[#allocation10 + $0x178] sm:$0xff]  ;;  %v271_v28 = vld [vmem:[#allocation10 + $0x3d0] sm:$0xff]  ;;  %v274_v29 = vld [vmem:[#allocation10 + $0x3e8] sm:$0xff]  ;;  %v793_v31 = vpack.c.bf16 %v191_v22, %v189_v21 }
  0x91   :  { %850 = vmatpush1.bf16.msra.mxu0 %v849_v27  ;;  %780 = vmatprep.subr.bf16.mxu1 %v779_v48  ;;  %v269_v27 = vld [vmem:[#allocation10 + $0x3c0] sm:$0xff]  ;;  %v795_v32 = vpack.c.bf16 %v196_v25, %v194_v24  ;;  %v195_v34 = vld [vmem:[#allocation10 + $0x170] sm:$0xff]  ;;  %v198_v37 = vld [vmem:[#allocation10 + $0x188] sm:$0xff] }
  0x92   :  { %852 = vmatprep.subr.bf16.mxu0 %v851_v30  ;;  %v276_v30 = vld [vmem:[#allocation10 + $0x3f8] sm:$0xff]  ;;  %v193_v33 = vld [vmem:[#allocation10 + $0x160] sm:$0xff]  ;;  %v873_v36 = vpack.c.bf16 %v271_v28, %v269_v27  ;;  %v275_v41 = vld [vmem:[#allocation10 + $0x3f0] sm:$0xff] }
  0x93   :  { %v146_v35 = vld [vmem:[#allocation5 + $0x8] sm:$0xff]  ;;  %v200_v38 = vld [vmem:[#allocation10 + $0x198] sm:$0xff]  ;;  %v797_v44 = vpack.c.bf16 %v195_v34, %v193_v33  ;;  %v199_v47 = vld [vmem:[#allocation10 + $0x190] sm:$0xff] }
  0x94   :  { %782 = vmatpush1.bf16.msra.mxu1 %v781_v59  ;;  %341 = vmatprep.mubr.f32.mxu1 %v146_v35  ;;  %v273_v40 = vld [vmem:[#allocation10 + $0x3e0] sm:$0xff]  ;;  %v116_v43 = vld [vmem:[#allocation8 + $0x18] sm:$0xff]  ;;  %v799_v45 = vpack.c.bf16 %v200_v38, %v198_v37  ;;  %v202_v49 = vld [vmem:[#allocation10 + $0x1a8] sm:$0xff] }
  0x95   :  { %854 = vmatpush1.bf16.msra.mxu0 %v853_v39  ;;  %784 = vmatprep.subr.bf16.mxu1 %v783_v60  ;;  %v875_v39 = vpack.c.bf16 %v276_v30, %v274_v29  ;;  %v197_v46 = vld [vmem:[#allocation10 + $0x180] sm:$0xff]  ;;  %v877_v48 = vpack.c.bf16 %v275_v41, %v273_v40  ;;  %v204_v50 = vld [vmem:[#allocation10 + $0x1b8] sm:$0xff]  ;;  %v115_v53 = vld [vmem:[#allocation8 + $0x10] sm:$0xff] }
  0x96   :  { %856 = vmatprep.subr.bf16.mxu0 %v855_v42  ;;  %v114_v42 = vld [vmem:[#allocation8 + $0x8] sm:$0xff]  ;;  %v113_v52 = vld [vmem:[#allocation8] sm:$0xff]  ;;  %v120_v55 = vld [vmem:[#allocation8 + $0x38] sm:$0xff]  ;;  %v801_v56 = vpack.c.bf16 %v199_v47, %v197_v46  ;;  %v803_v57 = vpack.c.bf16 %v204_v50, %v202_v49 }
  0x97   :  { %v201_v58 = vld [vmem:[#allocation10 + $0x1a0] sm:$0xff]  ;;  %v203_v59 = vld [vmem:[#allocation10 + $0x1b0] sm:$0xff]  ;;  %v147_v60 = vld [vmem:[#allocation5 + $0x10] sm:$0xff]  ;;  %v881_v61 = vpack.c.bf16 %v115_v53, %v113_v52 }
  0x98   :  { %786 = vmatpush1.bf16.msra.mxu1 %v785_v7  ;;  %v206_v62 = vld [vmem:[#allocation10 + $0x1c8] sm:$0xff]  ;;  %v117_v1 = vld [vmem:[#allocation8 + $0x20] sm:$0xff]  ;;  %v124_v4 = vld [vmem:[#allocation8 + $0x58] sm:$0xff]  ;;  %v805_v5 = vpack.c.bf16 %v203_v59, %v201_v58 }
  0x99   :  { %858 = vmatpush1.bf16.msra.mxu0 %v857_v51  ;;  %788 = vmatprep.subr.bf16.mxu1 %v787_v8  ;;  %v879_v51 = vpack.c.bf16 %v116_v43, %v114_v42  ;;  %v122_v3 = vld [vmem:[#allocation8 + $0x48] sm:$0xff]  ;;  %v205_v7 = vld [vmem:[#allocation10 + $0x1c0] sm:$0xff]  ;;  %v207_v8 = vld [vmem:[#allocation10 + $0x1d0] sm:$0xff] }
  0x9a   :  { %860 = vmatprep.subr.bf16.mxu0 %v859_v54  ;;  %v118_v54 = vld [vmem:[#allocation8 + $0x28] sm:$0xff]  ;;  %v212_v12 = vld [vmem:[#allocation10 + $0x1f8] sm:$0xff]  ;;  %v887_v13 = vpack.c.bf16 %v124_v4, %v122_v3  ;;  %v123_v15 = vld [vmem:[#allocation8 + $0x50] sm:$0xff]  ;;  %v809_v18 = vpack.c.bf16 %v207_v8, %v205_v7 }
  0x9b   :  { %v883_v0 = vpack.c.bf16 %v120_v55, %v118_v54  ;;  %v126_v16 = vld [vmem:[#allocation8 + $0x68] sm:$0xff]  ;;  %v128_v17 = vld [vmem:[#allocation8 + $0x78] sm:$0xff]  ;;  %v211_v21 = vld [vmem:[#allocation10 + $0x1f0] sm:$0xff] }
  0x9c   :  { %790 = vmatpush1.bf16.msra.mxu1 %v789_v19  ;;  %v125_v24 = vld [vmem:[#allocation8 + $0x60] sm:$0xff]  ;;  %v127_v25 = vld [vmem:[#allocation8 + $0x70] sm:$0xff]  ;;  %v132_v27 = vld [vmem:[#allocation8 + $0x98] sm:$0xff] }
  0x9d   :  { %862 = vmatpush1.bf16.msra.mxu0 %v861_v63  ;;  %792 = vmatprep.subr.bf16.mxu1 %v791_v20  ;;  %v208_v63 = vld [vmem:[#allocation10 + $0x1d8] sm:$0xff]  ;;  %v209_v20 = vld [vmem:[#allocation10 + $0x1e0] sm:$0xff]  ;;  %v893_v29 = vpack.c.bf16 %v127_v25, %v125_v24  ;;  %v134_v33 = vld [vmem:[#allocation8 + $0xa8] sm:$0xff] }
  0x9e   :  { %864 = vmatprep.subr.bf16.mxu0 %v863_v2  ;;  %v119_v2 = vld [vmem:[#allocation8 + $0x30] sm:$0xff]  ;;  %v807_v6 = vpack.c.bf16 %v208_v63, %v206_v62  ;;  %v813_v28 = vpack.c.bf16 %v211_v21, %v209_v20  ;;  %v136_v34 = vld [vmem:[#allocation8 + $0xb8] sm:$0xff]  ;;  %v133_v38 = vld [vmem:[#allocation8 + $0xa0] sm:$0xff] }
  0x9f   :  { %v885_v9 = vpack.c.bf16 %v119_v2, %v117_v1  ;;  %v145_v35 = vld [vmem:[#allocation5] sm:$0xff]  ;;  %v899_v37 = vpack.c.bf16 %v136_v34, %v134_v33  ;;  %v138_v40 = vld [vmem:[#allocation8 + $0xc8] sm:$0xff]  ;;  %v141_v50 = vld [vmem:[#allocation8 + $0xe0] sm:$0xff] }
  0xa0   :  { %794 = vmatpush1.bf16.msra.mxu1 %v793_v31  ;;  %v129_v31 = vld [vmem:[#allocation8 + $0x80] sm:$0xff]  ;;  %v140_v41 = vld [vmem:[#allocation8 + $0xd8] sm:$0xff]  ;;  %v142_v46 = vld [vmem:[#allocation8 + $0xe8] sm:$0xff] }
  0xa1   :  { %866 = vmatpush1.bf16.msra.mxu0 %v865_v11  ;;  %796 = vmatprep.subr.bf16.mxu1 %v795_v32  ;;  %v210_v11 = vld [vmem:[#allocation10 + $0x1e8] sm:$0xff]  ;;  %v131_v32 = vld [vmem:[#allocation8 + $0x90] sm:$0xff]  ;;  %v903_v43 = vpack.c.bf16 %v140_v41, %v138_v40  ;;  %v144_v47 = vld [vmem:[#allocation8 + $0xf8] sm:$0xff] }
  0xa2   :  { %868 = vmatprep.subr.bf16.mxu0 %v867_v14  ;;  %v121_v14 = vld [vmem:[#allocation8 + $0x40] sm:$0xff]  ;;  %v811_v19 = vpack.c.bf16 %v212_v12, %v210_v11  ;;  %v907_v49 = vpack.c.bf16 %v144_v47, %v142_v46  ;;  %v492_v53 = vld [vmem:[%s1370_s5 + $0x8] sm:$0xff]  ;;  %v1320_v54 = vld [vmem:[#allocation2] sm:$0xff] }
  0xa3   :  { %v889_v22 = vpack.c.bf16 %v123_v15, %v121_v14  ;;  %v491_v55 = vld [vmem:[%s1370_s5] sm:$0xff]  ;;  %v595_v58 = vld [vmem:[#allocation11 + $0x18] sm:$0xff]  ;;  %v597_v63 = vld [vmem:[#allocation11 + $0x28] sm:$0xff] }
  0xa4   :  { %798 = vmatpush1.bf16.msra.mxu1 %v797_v44  ;;  %v137_v44 = vld [vmem:[#allocation8 + $0xc0] sm:$0xff]  ;;  %v598_v3 = vld [vmem:[#allocation11 + $0x30] sm:$0xff]  ;;  %v605_v11 = vld [vmem:[#allocation11 + $0x68] sm:$0xff] }
  0xa5   :  { %870 = vmatpush1.bf16.msra.mxu0 %v869_v23  ;;  %800 = vmatprep.subr.bf16.mxu1 %v799_v45  ;;  %v891_v23 = vpack.c.bf16 %v128_v17, %v126_v16  ;;  %v139_v45 = vld [vmem:[#allocation8 + $0xd0] sm:$0xff]  ;;  %v596_v2 = vld [vmem:[#allocation11 + $0x20] sm:$0xff]  ;;  %v607_v12 = vld [vmem:[#allocation11 + $0x78] sm:$0xff] }
  0xa6   :  { %872 = vmatprep.subr.bf16.mxu0 %v871_v26  ;;  %v130_v26 = vld [vmem:[#allocation8 + $0x88] sm:$0xff]  ;;  %v917_v4 = vpack.c.bf16 %v598_v3, %v596_v2  ;;  %v600_v8 = vld [vmem:[#allocation11 + $0x40] sm:$0xff]  ;;  %v606_v15 = vld [vmem:[#allocation11 + $0x70] sm:$0xff] }
  0xa7   :  { %v895_v30 = vpack.c.bf16 %v132_v27, %v130_v26  ;;  %v604_v14 = vld [vmem:[#allocation11 + $0x60] sm:$0xff]  ;;  %v609_v17 = vld [vmem:[#allocation11 + $0x88] sm:$0xff]  ;;  %v610_v21 = vld [vmem:[#allocation11 + $0x90] sm:$0xff] }
  0xa8   :  { %802 = vmatpush1.bf16.msra.mxu1 %v801_v56  ;;  %v490_v56 = vld [vmem:[#allocation7] sm:$0xff]  ;;  %v925_v16 = vpack.c.bf16 %v606_v15, %v604_v14  ;;  %v608_v20 = vld [vmem:[#allocation11 + $0x80] sm:$0xff]  ;;  %v614_v27 = vld [vmem:[#allocation11 + $0xb0] sm:$0xff] }
  0xa9   :  { %874 = vmatpush1.bf16.msra.mxu0 %v873_v36  ;;  %804 = vmatprep.subr.bf16.mxu1 %v803_v57  ;;  %v897_v36 = vpack.c.bf16 %v131_v32, %v129_v31  ;;  %v593_v57 = vld [vmem:[#allocation11 + $0x8] sm:$0xff]  ;;  %v615_v24 = vld [vmem:[#allocation11 + $0xb8] sm:$0xff]  ;;  %v612_v26 = vld [vmem:[#allocation11 + $0xa0] sm:$0xff] }
  0xaa   :  { %876 = vmatprep.subr.bf16.mxu0 %v875_v39  ;;  %v135_v39 = vld [vmem:[#allocation8 + $0xb0] sm:$0xff]  ;;  %v911_v59 = vpack.c.bf16 %v595_v58, %v593_v57  ;;  %v616_v31 = vld [vmem:[#allocation11 + $0xc0] sm:$0xff]  ;;  %v621_v34 = vld [vmem:[#allocation11 + $0xe8] sm:$0xff] }
  0xab   :  { %v901_v42 = vpack.c.bf16 %v135_v39, %v133_v38  ;;  %v618_v33 = vld [vmem:[#allocation11 + $0xd0] sm:$0xff]  ;;  %v620_v38 = vld [vmem:[#allocation11 + $0xe0] sm:$0xff] }
  0xac   :  { %806 = vmatpush1.bf16.msra.mxu1 %v805_v5  ;;  %v601_v5 = vld [vmem:[#allocation11 + $0x48] sm:$0xff]  ;;  %v622_v39 = vld [vmem:[#allocation11 + $0xf0] sm:$0xff]  ;;  %v570_v46 = vld [vmem:[%s1371_s6] sm:$0x3] }
  0xad   :  { %878 = vmatpush1.bf16.msra.mxu0 %v877_v48  ;;  %808 = vmatprep.subr.bf16.mxu1 %v807_v6  ;;  %v905_v48 = vpack.c.bf16 %v139_v45, %v137_v44  ;;  %v603_v6 = vld [vmem:[#allocation11 + $0x58] sm:$0xff]  ;;  %v941_v40 = vpack.c.bf16 %v622_v39, %v620_v38 }
  0xae   :  { %880 = vmatprep.subr.bf16.mxu0 %v879_v51  ;;  %v143_v51 = vld [vmem:[#allocation8 + $0xf0] sm:$0xff]  ;;  %v919_v7 = vpack.c.bf16 %v603_v6, %v601_v5 }
  0xaf   :  { %v909_v52 = vpack.c.bf16 %v143_v51, %v141_v50 }
  0xb0   :  { %413 = vmatmul.mubr.f32.vlgmr.msra.gmra.mrb[0].mxu0 %v147_v60  ;;  %810 = vmatpush1.bf16.msra.mxu1 %v809_v18  ;;  %v592_v60 = vld [vmem:[#allocation11] sm:$0xff]  ;;  %v611_v18 = vld [vmem:[#allocation11 + $0x98] sm:$0xff] }
  0xb1   :  { %882 = vmatpush1.bf16.msra.mxu0 %v881_v61  ;;  %483 = vmatprep.mubr.f32.mxu0 %v1162_v10  ;;  %v594_v61 = vld [vmem:[#allocation11 + $0x10] sm:$0xff] }
  0xb2   :  { %884 = vmatprep.subr.bf16.mxu0 %v883_v0  ;;  %812 = vmatprep.subr.bf16.mxu1 %v811_v19  ;;  %v913_v62 = vpack.c.bf16 %v594_v61, %v592_v60  ;;  %v599_v0 = vld [vmem:[#allocation11 + $0x38] sm:$0xff]  ;;  %v927_v19 = vpack.c.bf16 %v611_v18, %v609_v17 }
  0xb3   :  { %v915_v1 = vpack.c.bf16 %v599_v0, %v597_v63  ;;  %v624_v63 = vld [vmem:[%s1373_s8] sm:$0x3]  ;;  %s1098_s8 = scalar_lea.vmem %s734_s28, 128 }
  0xb4   :  { %814 = vmatpush1.bf16.msra.mxu1 %v813_v28  ;;  %v933_v28 = vpack.c.bf16 %v614_v27, %v612_v26  ;;  %p1099_p6 = scmp.ne.s32.totalorder %s734_s28, %s1098_s8  ;;  %p1104_p8 = scmp.lt.s32.totalorder %s1098_s8, %s1098_s8 }
  0xb5   :  { %886 = vmatpush1.bf16.msra.mxu0 %v885_v9  ;;  %912 = vmatprep.subr.bf16.mxu1 %v911_v59  ;;  %v602_v9 = vld [vmem:[#allocation11 + $0x50] sm:$0xff] }
  0xb6   :  { %888 = vmatprep.subr.bf16.mxu0 %v887_v13  ;;  %v923_v13 = vpack.c.bf16 %v607_v12, %v605_v11  ;;  %p1105_p9 = por %p1104_p8, %p1103_p7 }
  0xb7   :  { %342 = vmatmul.mubr.f32.vlgmr.msra.gmra.mrb[0].mxu1 %v145_v35  ;;  %v623_v35 = vld [vmem:[#allocation11 + $0xf8] sm:$0xff] }
  0xb8   :  { %700 = vmatprep.mubr.f32.mxu1 %v1162_v10  ;;  %914 = vmatpush1.bf16.msra.mxu1 %v913_v62  ;;  %p1106_p10 = pnand %p1105_p9, %p1099_p6 }
  0xb9   :  { %890 = vmatpush1.bf16.msra.mxu0 %v889_v22  ;;  %916 = vmatprep.subr.bf16.mxu1 %v915_v1  ;;  %v929_v22 = vpack.c.bf16 %v610_v21, %v608_v20 }
  0xba   :  { %892 = vmatprep.subr.bf16.mxu0 %v891_v23  ;;  %v613_v23 = vld [vmem:[#allocation11 + $0xa8] sm:$0xff] }
  0xbb   :  { %v931_v25 = vpack.c.bf16 %v615_v24, %v613_v23 }
  0xbc   :  { %918 = vmatpush1.bf16.msra.mxu1 %v917_v4 }
  0xbd   :  { %894 = vmatpush1.bf16.msra.mxu0 %v893_v29  ;;  %920 = vmatprep.subr.bf16.mxu1 %v919_v7  ;;  %v617_v29 = vld [vmem:[#allocation11 + $0xc8] sm:$0xff] }
  0xbe   :  { %896 = vmatprep.subr.bf16.mxu0 %v895_v30  ;;  %v619_v30 = vld [vmem:[#allocation11 + $0xd8] sm:$0xff] }
  0xbf   :  { %v935_v32 = vpack.c.bf16 %v619_v30, %v617_v29 }
  0xc1   :  { %898 = vmatpush1.bf16.msra.mxu0 %v897_v36  ;;  %v937_v36 = vpack.c.bf16 %v618_v33, %v616_v31 }
  0xc2   :  { %900 = vmatprep.subr.bf16.mxu0 %v899_v37  ;;  %v939_v37 = vpack.c.bf16 %v623_v35, %v621_v34 }
  0xc5   :  { %902 = vmatpush1.bf16.msra.mxu0 %v901_v42 }
  0xc6   :  { %904 = vmatprep.subr.bf16.mxu0 %v903_v43  ;;  %v572_v43 = vlaneseq }
  0xc8   :  { %v573_v44 = vshrl.u32 %v572_v43, 7 }
  0xc9   :  { %906 = vmatpush1.bf16.msra.mxu0 %v905_v48 }
  0xca   :  { %908 = vmatprep.subr.bf16.mxu0 %v907_v49  ;;  %v574_v45 = vsub.s32 0, %v573_v44 }
  0xcc   :  { %v575_v47 = vrot.slane %v570_v46, %v574_v45  ;;  %v629_v0 = vrot.slane %v624_v63, %v574_v45 }
  0xcd   :  { %910 = vmatpush1.bf16.msra.mxu0 %v909_v52 }
  0xce   :  { %497 = vmatprep.subr.mxu0 %v492_v53 }
  0xd0   :  { %484 = vmatmul.mubr.f32.vlgmr.msra.gmra.mrb[0].mxu0 %v1320_v54 }
  0xd1   :  { %498 = vmatpush1.msra.mxu0 %v491_v55  ;;  %561 = vmatprep.mubr.f32.mxu0 %v1162_v10  ;;  %v921_v10 = vpack.c.bf16 %v602_v9, %v600_v8  ;;  %v578_v55 = vsub.s32 1, %v573_v44 }
  0xd3   :  { %922 = vmatpush1.bf16.msra.mxu1 %v921_v10  ;;  %v633_v1 = vrot.slane %v624_v63, %v578_v55 }
  0xd4   :  { %924 = vmatprep.subr.bf16.mxu1 %v923_v13 }
  0xd7   :  { %926 = vmatpush1.bf16.msra.mxu1 %v925_v16 }
  0xd8   :  { %749 = vmatmul.mubr.msk.f32.vlgmr.msra.gmra.mrb[0].mxu0 %vm493_vm0, %v490_v56  ;;  %928 = vmatprep.subr.bf16.mxu1 %v927_v19  ;;  %v579_v56 = vrot.slane %v570_v46, %v578_v55 }
  0xdb   :  { %930 = vmatpush1.bf16.msra.mxu1 %v929_v22 }
  0xdc   :  { %932 = vmatprep.subr.bf16.mxu1 %v931_v25 }
  0xdf   :  { %934 = vmatpush1.bf16.msra.mxu1 %v933_v28 }
  0xe0   :  { %936 = vmatprep.subr.bf16.mxu1 %v935_v32 }
  0xe3   :  { %938 = vmatpush1.bf16.msra.mxu1 %v937_v36 }
  0xe4   :  { %940 = vmatprep.subr.bf16.mxu1 %v939_v37 }
  0xe7   :  { %942 = vmatpush1.bf16.msra.mxu1 %v941_v40 }
 0x18a   :  { %v343_v41 = vpop.f32.mrb[0].mxu1 }
 0x18b   :  { %v345_v42 = vpop.f32.mrb[1].mxu1 }
 0x1ab   :  { %v563_v48 = vpop.f32.mrb[0].mxu0 }
 0x1ac   :  { %v943_v49 = vadd.f32 %v563_v48, %v343_v41  ;;  %v565_v50 = vpop.f32.mrb[1].mxu0 }
 0x1ad   :  { %v944_v51 = vadd.f32 %v565_v50, %v345_v42 }
 0x1ae   :  { %v582_v52 = vadd.f32 %v943_v49, %v575_v47 }
 0x1af   :  { %v583_v57 = vadd.f32 %v944_v51, %v579_v56 }
 0x1b0   :  { %v750_v53 = vmul.f32 -1.442695, %v582_v52 }
 0x1b2   :  { %960 = vpow2.f32 %v750_v53 }
 0x1b3   :  { %962 = vtanh.f32 %v583_v57 }
 0x1bc   :  { %v961_v58 = vpop.eup %960 }
 0x1bd   :  { %v587_v59 = vadd.f32 1.0, %v961_v58  ;;  %v963_v60 = vpop.eup %962 }
 0x1bf   :  { %964 = vrcp.f32 %v587_v59 }
 0x1c9   :  { %v965_v61 = vpop.eup %964 }
 0x1ca   :  { %v591_v62 = vmul.f32 %v965_v61, %v963_v60 }
 0x1cc   :  { %701 = vmatmul.mubr.f32.vlgmr.msra.gmra.mrb[2].mxu1 %v591_v62 }
 0x29f   :  { %v702_v2 = vpop.f32.mrb[2].mxu1 }
 0x2a0   :  { %v703_v3 = vadd.f32 %v702_v2, %v629_v0  ;;  %v704_v4 = vpop.f32.mrb[3].mxu1 }
 0x2a1   :  { %v705_v5 = vadd.f32 %v704_v4, %v633_v1 }
 0x2a2   :  { %vm707_vm1 = vcmp.gt.f32.partialorder %v703_v3, 0.0  ;;  %v709_v6 = vmul.f32 0.4, %v703_v3 }
 0x2a3   :  { %v710_v7 = vmul.f32 0.4, %v705_v5  ;;  %vm708_vm2 = vcmp.gt.f32.partialorder %v705_v5, 0.0 }
 0x2a4   :  { %v711_v8 = vsel %vm707_vm1, %v703_v3, %v709_v6 }
 0x2a5   :  { %v713_v9 = vadd.f32 %v711_v8, %v1320_v54  ;;  %v712_v10 = vsel %vm708_vm2, %v705_v5, %v710_v7 }
 0x2a6   :  { %716 = vst [vmem:[#allocation14] sm:$0xff] %v712_v10 }
 0x2a7   :  { %v714_v11 = vmul.f32 0.70710677, %v713_v9 }
 0x2a8   :  { %1109 = shalt.err (!%p1106_p10)
}
 0x2a9   :  { %s1110_s11 = scalar_lea.hbm %s1375_s10, 128 }
 0x2aa   :  { %p1111_p11 = scmp.ne.s32.totalorder %s1375_s10, %s1110_s11  ;;  %p1114_p12 = scmp.lt.u32.totalorder %s1110_s11, %s1375_s10 }
 0x2ac   :  { %p1116_p13 = pnand %p1114_p12, %p1111_p11 }
 0x2ae   :  { %1119 = shalt.err (!%p1116_p13)
}
 0x2af   :  { %736 = dma.vmem_to_hbm [thread:$0]  %s734_s28, 128, %s1375_s10, [#allocation15]   ;;  %715 = vst [vmem:[#allocation13] sm:$0xff] %v714_v11 }
 0x2b0   :  { %s1120_s18 = scalar_lea.vmem %s1334_s3, 128  ;;  %p1125_p1 = scmp.lt.s32.totalorder %s1334_s3, %s1334_s3 }
 0x2b1   :  { %p1121_p0 = scmp.ne.s32.totalorder %s1334_s3, %s1120_s18  ;;  %p1126_p2 = scmp.lt.s32.totalorder %s1120_s18, %s1120_s18 }
 0x2b3   :  { %p1127_p3 = por %p1126_p2, %p1125_p1 }
 0x2b5   :  { %p1128_p4 = pnand %p1127_p3, %p1121_p0 }
 0x2b7   :  { %1131 = shalt.err (!%p1128_p4)
}
 0x2b8   :  { %s1132_s0 = scalar_lea.hbm %s1374_s9, 128 }
 0x2b9   :  { %p1133_p5 = scmp.ne.s32.totalorder %s1374_s9, %s1132_s0  ;;  %p1136_p6 = scmp.lt.u32.totalorder %s1132_s0, %s1374_s9 }
 0x2bb   :  { %p1138_p7 = pnand %p1136_p6, %p1133_p5 }
 0x2bd   :  { %1141 = shalt.err (!%p1138_p7)
}
 0x2be   :  { %726 = dma.vmem_to_hbm [thread:$0]  %s1334_s3, 128, %s1374_s9, [#allocation4]  }
 0x2bf   :  { %1150 = dma.done.wait [#allocation4], 128  }
 0x2c0   :  { %1151 = vsyncadd [#allocation4], 4294967168 }
 0x2c1   :  { %1152 = dma.done.wait [#allocation15], 128  }
 0x2c2   :  { %1153 = vsyncadd [#allocation15], 4294967168 }
 0x2c3   :  { %743 = vsyncpa [#allocation3], 1 }
 0x2c4   :  { %744 = vsyncpa [#allocation6], 1 }
 0x2c5   :  { %745 = vsyncpa [#allocation9], 1 }
 0x2c6   :  { %746 = vsyncpa [#allocation12], 1 }
 0x2c7   :  { %747 = vsyncpa [#allocation4], 1 }
 0x2c8   :  { %748 = vsyncpa [#allocation15], 1 }

</bundles_post_ra>
